<compile_context>
chip_gen: v6e
topology: v6e:2x2x1
jax: 0.10.0
libtpu: 0.0.40
codegen_flags: <defaults>
</compile_context>

<pallas_src>
import functools

import jax
import jax.numpy as jnp
from jax.experimental import pallas as pl
from jax.experimental.pallas import tpu as pltpu


def _adaln_kernel(feat_ref, mod_ref, out_ref, *, eps):
    # feat_ref: (TB, TL, C), mod_ref: (TB, 2, C)  [row 0 = scale+1, row 1 = shift]
    x = feat_ref[...].astype(jnp.float32)                         # (TB, TL, C)
    # One-pass moments: var = E[x^2] - mean^2 (no centered temp kept live).
    mean = jnp.mean(x, axis=-1, keepdims=True)                    # (TB, TL, 1)
    mean_sq = jnp.mean(x * x, axis=-1, keepdims=True)             # (TB, TL, 1)
    var = mean_sq - mean * mean
    xn = (x - mean) * jax.lax.rsqrt(var + eps)                    # (TB, TL, C)
    scale_p1 = mod_ref[:, 0:1, :].astype(jnp.float32)             # (TB, 1, C)
    shift = mod_ref[:, 1:2, :].astype(jnp.float32)                # (TB, 1, C)
    # NOTE: on v7x with bf16 feat the modulation could be done in packed bf16
    # VPU ops if VALU ever becomes the binding slot; kept in f32 here since the
    # kernel is HBM-bound on all current generations.
    out_ref[...] = (xn * scale_p1 + shift).astype(out_ref.dtype)


def _vmem_limit_bytes():
    """~70% of this chip's per-core VMEM (leaves headroom for Mosaic scratch)."""
    try:
        cap = pltpu.get_tpu_info().vmem_capacity_bytes
    except Exception:
        cap = 64 * 1024 * 1024          # conservative (v7x per-TC) fallback
    return int(0.7 * cap)


def _choose_tiles(B, L, C, itemsize, vmem_limit_bytes,
                  target_tile_bytes=4 * 1024 * 1024):
    """Pick (TB, TL) for (TB, TL, C) feat blocks.

    Per-element VMEM cost per grid step:
      2x double-buffered input tiles + 2x output tiles (feat dtype)
      + ~3 whole-tile f32 temporaries (upcast x, x*x reduce, xn).
    The I/O tile itself is capped at ~4 MiB: streaming kernels saturate HBM
    well below that, so bigger tiles only add VMEM/vreg pressure.
    """
    pack = max(8, 32 // itemsize)                 # 8 (f32), 16 (bf16), 32 (i8/fp8)
    per_elem = 4 * itemsize + 3 * 4               # 2*in + 2*out buffers + f32 temps
    cap_elems = max(C * pack, (vmem_limit_bytes // 2) // per_elem)
    target_elems = max(C * pack, target_tile_bytes // itemsize)
    tile_elems = min(cap_elems, target_elems)

    rows = tile_elems // C
    if rows >= L or L <= pack:
        tl = L                                    # full-extent block (always legal)
        tb = max(1, min(B, tile_elems // max(1, L * C)))
    else:
        tl = max(pack, (rows // pack) * pack)     # sublane-packing multiple
        tb = 1

    # Keep >= 2 grid steps so v7x's two TensorCores both get work.
    if pl.cdiv(B, tb) * pl.cdiv(L, tl) < 2:
        if B > 1:
            tb = pl.cdiv(B, 2)
        elif L > pack:
            half = pl.cdiv(L, 2)
            tl = min(L, pl.cdiv(half, pack) * pack)
    return tb, tl


def adaln_before_head(feat, cond_bd, w, b, *, eps=1e-6):
    """feat: (B, L, C); cond_bd: (B, 1, D); w: (D, 2C) (PyTorch Linear.weight.T,
    scale columns first, shift columns second); b: (2C,)."""
    B, L, C = feat.shape
    Bc, cond_len, D = cond_bd.shape
    assert Bc == B
    assert cond_len == 1, "this wrapper assumes cond_len == 1 (broadcast over L)"
    assert w.shape == (D, 2 * C) and b.shape == (2 * C,)

    # --- ada_lin hoisted out of the kernel: one XLA matmul for the whole batch.
    # Fold the "+1" on scale into the bias (done once per call, not per tile).
    b_eff = b.astype(jnp.float32).at[:C].add(1.0)                       # (2C,)
    silu = jax.nn.silu(cond_bd.astype(jnp.float32))                     # (B,1,D)
    ada = jnp.einsum("bld,dk->blk", silu, w.astype(jnp.float32)) + b_eff
    # (B,1,2C) -> (B,2,C): row 0 = scale+1, row 1 = shift — matches
    # PyTorch .view(B, 1, 2, C).unbind(2) column ordering.
    mod = ada.reshape(B, 2, C)

    itemsize = feat.dtype.itemsize
    vmem_limit = _vmem_limit_bytes()
    tb, tl = _choose_tiles(B, L, C, itemsize, vmem_limit)
    grid = (pl.cdiv(B, tb), pl.cdiv(L, tl))       # padded tail blocks are fine:
                                                  # LN is row-independent and OOB
                                                  # writes are dropped by Pallas.

    kernel = functools.partial(_adaln_kernel, eps=eps)

    cost = pl.CostEstimate(
        flops=7 * B * L * C,
        transcendentals=B * L,                    # one rsqrt per row
        bytes_accessed=2 * B * L * C * itemsize + B * 2 * C * 4,
    )

    return pl.pallas_call(
        kernel,
        out_shape=jax.ShapeDtypeStruct((B, L, C), feat.dtype),
        grid_spec=pltpu.PrefetchScalarGridSpec(
            num_scalar_prefetch=0,
            grid=grid,
            in_specs=[
                pl.BlockSpec((tb, tl, C), lambda bi, li: (bi, li, 0)),   # feat
                pl.BlockSpec((tb, 2, C), lambda bi, li: (bi, 0, 0)),     # scale+1/shift
            ],
            out_specs=pl.BlockSpec((tb, tl, C), lambda bi, li: (bi, li, 0)),
        ),
        compiler_params=pltpu.CompilerParams(
            dimension_semantics=("parallel", "parallel"),
            vmem_limit_bytes=vmem_limit,
        ),
        cost_estimate=cost,
    )(feat, mod)


def adaln_before_head_ref(feat, cond_bd, w, b, *, eps=1e-6):
    """Pure-JAX reference mirroring the PyTorch forward."""
    silu = cond_bd * jax.nn.sigmoid(cond_bd)
    ada = jnp.einsum("bld,dk->blk", silu, w) + b                 # (B, 1, 2C)
    C = feat.shape[-1]
    scale, shift = ada[..., :C], ada[..., C:]
    mean = jnp.mean(feat, axis=-1, keepdims=True)
    var = jnp.mean((feat - mean) ** 2, axis=-1, keepdims=True)
    xn = (feat - mean) / jnp.sqrt(var + eps)
    return xn * (scale + 1.0) + shift


if __name__ == "__main__":
    # Small but layout-aligned demo shapes: C multiple of 128.
    B, L, C, D = 2, 16, 128, 32   # batch, seq, embed_dim, cond_dim

    key = jax.random.PRNGKey(0)
    k_feat, k_cond, k_w, k_b = jax.random.split(key, 4)

    feat = jax.random.normal(k_feat, (B, L, C), dtype=jnp.float32)
    cond_bd = jax.random.normal(k_cond, (B, 1, D), dtype=jnp.float32)

    # "Linear(cond_dim, 2*embed_dim)" params with W stored as (D, 2C).
    w = jax.random.normal(k_w, (D, 2 * C), dtype=jnp.float32) * 0.05
    b = jax.random.normal(k_b, (2 * C,), dtype=jnp.float32) * 0.05

    out = adaln_before_head(feat, cond_bd, w, b)
    out = jax.block_until_ready(out)

    ref = adaln_before_head_ref(feat, cond_bd, w, b)
    assert out.shape == (B, L, C)
    assert jnp.allclose(out, ref, atol=2e-5, rtol=2e-5), "mismatch vs reference"

    print("KERNEL_OK")
</pallas_src>

<mosaic_0001>
module attributes {stable_mosaic.version = 11 : i64} {
  func.func @_adaln_kernel(%arg0: i32, %arg1: i32, %arg2: memref<1x16x128xf32, #tpu.memory_space<vmem>>, %arg3: memref<1x2x128xf32, #tpu.memory_space<vmem>>, %arg4: memref<1x16x128xf32, #tpu.memory_space<vmem>>) attributes {dimension_semantics = [#tpu.dimension_semantics<parallel>, #tpu.dimension_semantics<parallel>], iteration_bounds = array<i64: 2, 1>, scalar_prefetch = 0 : i64, scratch_operands = 0 : i64, tpu.core_type = #tpu.core_type<tc>, window_params = [{transform_indices = @transform_0, window_bounds = array<i64: 1, 16, 128>}, {transform_indices = @transform_1, window_bounds = array<i64: 1, 2, 128>}, {transform_indices = @transform_2, window_bounds = array<i64: 1, 16, 128>}]} {
    %c0 = arith.constant 0 : index
    %c0_0 = arith.constant 0 : index
    %c0_1 = arith.constant 0 : index
    %0 = vector.load %arg2[%c0, %c0_0, %c0_1] : memref<1x16x128xf32, #tpu.memory_space<vmem>>, vector<1x16x128xf32>
    %cst = arith.constant dense<0.000000e+00> : vector<1x16xf32>
    %1 = vector.multi_reduction <add>, %0, %cst [2] : vector<1x16x128xf32> to vector<1x16xf32>
    %2 = vector.shape_cast %1 : vector<1x16xf32> to vector<1x16x1xf32>
    %cst_2 = arith.constant 1.280000e+02 : f32
    %3 = vector.broadcast %cst_2 : f32 to vector<1x16x1xf32>
    %4 = arith.divf %2, %3 : vector<1x16x1xf32>
    %5 = arith.mulf %0, %0 : vector<1x16x128xf32>
    %cst_3 = arith.constant dense<0.000000e+00> : vector<1x16xf32>
    %6 = vector.multi_reduction <add>, %5, %cst_3 [2] : vector<1x16x128xf32> to vector<1x16xf32>
    %7 = vector.shape_cast %6 : vector<1x16xf32> to vector<1x16x1xf32>
    %cst_4 = arith.constant 1.280000e+02 : f32
    %8 = vector.broadcast %cst_4 : f32 to vector<1x16x1xf32>
    %9 = arith.divf %7, %8 : vector<1x16x1xf32>
    %10 = arith.mulf %4, %4 : vector<1x16x1xf32>
    %11 = arith.subf %9, %10 : vector<1x16x1xf32>
    %12 = vector.broadcast %4 : vector<1x16x1xf32> to vector<1x16x128xf32>
    %13 = arith.subf %0, %12 : vector<1x16x128xf32>
    %cst_5 = arith.constant 9.99999997E-7 : f32
    %14 = vector.broadcast %cst_5 : f32 to vector<1x16x1xf32>
    %15 = arith.addf %11, %14 : vector<1x16x1xf32>
    %16 = math.rsqrt %15 : vector<1x16x1xf32>
    %17 = vector.broadcast %16 : vector<1x16x1xf32> to vector<1x16x128xf32>
    %18 = arith.mulf %13, %17 : vector<1x16x128xf32>
    %c0_6 = arith.constant 0 : index
    %c0_7 = arith.constant 0 : index
    %c0_8 = arith.constant 0 : index
    %19 = vector.load %arg3[%c0_6, %c0_7, %c0_8] : memref<1x2x128xf32, #tpu.memory_space<vmem>>, vector<1x1x128xf32>
    %c0_9 = arith.constant 0 : index
    %c1 = arith.constant 1 : index
    %c0_10 = arith.constant 0 : index
    %20 = vector.load %arg3[%c0_9, %c1, %c0_10] : memref<1x2x128xf32, #tpu.memory_space<vmem>>, vector<1x1x128xf32>
    %21 = vector.broadcast %19 : vector<1x1x128xf32> to vector<1x16x128xf32>
    %22 = arith.mulf %18, %21 : vector<1x16x128xf32>
    %23 = vector.broadcast %20 : vector<1x1x128xf32> to vector<1x16x128xf32>
    %24 = arith.addf %22, %23 : vector<1x16x128xf32>
    %c0_11 = arith.constant 0 : index
    %c0_12 = arith.constant 0 : index
    %c0_13 = arith.constant 0 : index
    %25 = vector.load %arg4[%c0_11, %c0_12, %c0_13] : memref<1x16x128xf32, #tpu.memory_space<vmem>>, vector<1x16x128xf32>
    tpu.vector_store %arg4[%c0_11, %c0_12, %c0_13], %24 {strides = array<i32>} : memref<1x16x128xf32, #tpu.memory_space<vmem>>, vector<1x16x128xf32>,
    return
  }
  func.func @transform_0(%arg0: i32, %arg1: i32) -> (i32, i32, i32) {
    %c0_i32 = arith.constant 0 : i32
    %c0_i32_0 = arith.constant 0 : i32
    return %arg0, %arg1, %c0_i32 : i32, i32, i32
  }
  func.func @transform_1(%arg0: i32, %arg1: i32) -> (i32, i32, i32) {
    %c0_i32 = arith.constant 0 : i32
    %c0_i32_0 = arith.constant 0 : i32
    %c0_i32_1 = arith.constant 0 : i32
    return %arg0, %c0_i32, %c0_i32_0 : i32, i32, i32
  }
  func.func @transform_2(%arg0: i32, %arg1: i32) -> (i32, i32, i32) {
    %c0_i32 = arith.constant 0 : i32
    %c0_i32_0 = arith.constant 0 : i32
    return %arg0, %arg1, %c0_i32 : i32, i32, i32
  }
}

</mosaic_0001>

<bundles_post_ra>
// kernel: tpu_custom_call.1
= control target key start
LH: loop header
LB: loop body
LE: loop exit
PB: predicated region body
PF: predicated region fallthrough
CT: control target
= control target key end

     0   :  { %7 = vsyncpa [#allocation3], 0  ;;  %s835_s0 = inlined_call_operand.hbm [shape: f32[2,16,128], index: 0, kind: input, shape index: {}]   ;;  %s836_s1 = inlined_call_operand.hbm [shape: f32[2,2,128], index: 1, kind: input, shape index: {}]   ;;  %s837_s2 = inlined_call_operand.hbm [shape: f32[2,16,128], index: 2, kind: output, shape index: {}]  }
   0x1   :  { %9 = vsyncpa [#allocation3 + $0x1], 0 }
   0x2   :  { %10 = vsyncpa [#allocation6], 0 }
   0x3   :  { %12 = vsyncpa [#allocation6 + $0x1], 0 }
   0x4   :  { %13 = vsyncpa [#allocation4], 0 }
   0x5   :  { %15 = vsyncpa [#allocation4 + $0x1], 0  ;;  %s651_s9 = smov 0   ;;  %s653_s10 = smov 0  }
   0x6   :  { %s655_s11 = smov 0   ;;  %s657_s12 = smov 0  }
   0x7   :  { %s659_s13 = smov 0   ;;  %s661_s14 = smov 0  }
   0x8 LB: > { %s390_s15 = sadd.s32 4294967295, %s627_s14   ;;  %s391_s16 = sadd.s32 4294967294, %s627_s14   ;;  %s627_s14 = sphi %s661_s14, %s21_s14   ;;  %s623_s13 = sphi %s659_s13, %s848_s13   ;;  %s619_s12 = sphi %s657_s12, %s847_s12   ;;  %s615_s11 = sphi %s655_s11, %s846_s11   ;;  %s611_s10 = sphi %s653_s10, %s845_s10   ;;  %s607_s9 = sphi %s651_s9, %s844_s9  }
   0x9   : > { %s33_s17 = sadd.s32 1, %s623_s13  ;;  %s42_s18 = sadd.s32 1, %s615_s11 }
   0xa   : > { %p35_p0 = scmp.ge.s32.totalorder %s33_s17, 2  ;;  %p49_p1 = scmp.ne.s32.totalorder %s615_s11, %s611_s10 }
   0xb   : > { %p50_p2 = scmp.eq.s32.totalorder %s627_s14, 0  ;;  %p55_p3 = scmp.ne.s32.totalorder %s611_s10, %s607_s9 }
   0xc   : > { %s850_s17 = smov (%p35_p0, %s33_s17), 0  ;;  %p56_p5 = scmp.eq.s32.totalorder %s390_s15, 0 }
   0xd   : > { %p692_p4 = por %p50_p2, %p49_p1  ;;  %s37_s20 = ssub.s32 %s623_s13, %s850_s17 }
   0xe   : > { %p107_p6 = scmp.eq.s32.totalorder %s390_s15, 1  ;;  %p40_p7 = scmp.eq.s32.totalorder %s37_s20, 0 }
   0xf   : > { %p698_p8 = por %p56_p5, %p55_p3  ;;  %p113_p10 = scmp.eq.s32.totalorder %s391_s16, 1 }
  0x10   : > { %p702_p9 = por %p107_p6, %p49_p1  ;;  %p393_p12 = scmp.ge.s32.totalorder %s627_s14, 2 }
  0x11   : > { %s707_s23 = scalar_select %p40_p7, %s615_s11, %s42_s18  }
  0x12   : > { %p709_p11 = por %p113_p10, %p55_p3  ;;  %p429_p13 = scmp.lt.s32.totalorder %s627_s14, 2 }
  0x13   : > { %s716_s25 = sand.u32 1, %s615_s11   ;;  %s410_s27 = sshll.u32 %s623_s13, 8 }
  0x14   : > { %s394_s26 = sshll.u32 %s716_s25, 4  ;;  %s145_s30 = scalar_lea.hbm %s835_s0, %s410_s27 }
  0x15   : > { %s137_s3 = scalar_lea.vmem [#allocation2], %s394_s26  ;;  %p725_p0 = pnand %p429_p13, %p692_p4 }
  0x16   : > { %s146_s4 = sshll.u32 %s137_s3, 4  ;;  %p399_p1 = scmp.ge.s32.totalorder %s627_s14, 1  ;;  %s147_s4 = int_to_ptr.vmem [resolvable:$true] %s146_s4 }
  0x17   : > { %s134_s6 = scalar_lea.sflag [#allocation3], %s716_s25  ;;  %p489_p2 = pneg %p725_p0 }
  0x18   : > { %s500_s7 = scalar_lea.vmem %s147_s4, 256  ;;  %s629_s8 = smov [#allocation2]  }
  0x19   : > { %p501_p3 = scmp.ne.s32.totalorder %s147_s4, %s500_s7  ;;  %s505_s15 = sshll.u32 %s629_s8, 4  ;;  %s506_s15 = int_to_ptr.vmem [resolvable:$false] %s505_s15 }
  0x1a   : > { %s507_s16 = scalar_lea.vmem %s506_s15, 512  ;;  %p508_p4 = scmp.lt.s32.totalorder %s147_s4, %s506_s15 }
  0x1b   : > { %p503_p5 = pnand %p501_p3, %p489_p2  ;;  %p509_p7 = scmp.lt.s32.totalorder %s507_s16, %s500_s7 }
  0x1d   : > { %p504_p6 = pneg %p503_p5  ;;  %p510_p10 = por %p509_p7, %p508_p4 }
  0x1f   : > { %p511_p13 = pnand %p510_p10, %p504_p6 }
  0x21   : > { %514 = shalt.err (!%p511_p13)
}
  0x22   : > { %s630_s18 = smov 128   ;;  %s631_s19 = smov 8  }
  0x23   : > { %421 = dma.hbm_to_vmem [thread:$0]  (!%p725_p0), %s145_s30, 256, %s147_s4, %s134_s6, %s630_s18, %s630_s18, %s631_s19  }
  0x24   : > { %p172_p3 = scmp.lt.s32.totalorder %s627_s14, 3  ;;  %s397_s20 = sshll.u32 %s716_s25, 1 }
  0x25   : > { %s398_s26 = sshll.u32 %s623_s13, 5  ;;  %s160_s7 = scalar_lea.vmem [#allocation5], %s397_s20 }
  0x26   : > { %p743_p5 = pnand %p399_p1, %p172_p3  ;;  %s165_s3 = scalar_lea.hbm %s836_s1, %s398_s26 }
  0x27   : > { %s167_s8 = sshll.u32 %s160_s7, 4  ;;  %s157_s15 = scalar_lea.sflag [#allocation6], %s716_s25  ;;  %s168_s8 = int_to_ptr.vmem [resolvable:$true] %s167_s8 }
  0x28   : > { %s528_s16 = scalar_lea.vmem %s168_s8, 32  ;;  %s632_s30 = smov [#allocation5]  }
  0x29   : > { %p529_p6 = scmp.ne.s32.totalorder %s168_s8, %s528_s16  ;;  %s533_s4 = sshll.u32 %s632_s30, 4  ;;  %s534_s4 = int_to_ptr.vmem [resolvable:$false] %s533_s4 }
  0x2a   : > { %s535_s6 = scalar_lea.vmem %s534_s4, 64  ;;  %p536_p1 = scmp.lt.s32.totalorder %s168_s8, %s534_s4 }
  0x2b   : > { %p531_p4 = pnand %p529_p6, %p489_p2  ;;  %p537_p10 = scmp.lt.s32.totalorder %s535_s6, %s528_s16 }
  0x2d   : > { %p532_p7 = pneg %p531_p4  ;;  %p538_p13 = por %p537_p10, %p536_p1 }
  0x2f   : > { %p539_p3 = pnand %p538_p13, %p532_p7 }
  0x31   : > { %542 = shalt.err (!%p539_p3)
}
  0x32   : > { %424 = dma.hbm_to_vmem [thread:$0]  (!%p725_p0), %s165_s3, 32, %s168_s8, %s157_s15  }
  0x33   : > { %176 = sbr.rel (%p743_p5) target bundleno = 245 (0xf5), region = 28  ;;  %s759_s25 = sand.u32 (!%p743_p5), 1, %s611_s10  }
  0x34   : > { %s400_s18 = sshll.u32 (!%p743_p5), %s759_s25, 4  ;;  %s179_s19 = scalar_lea.sflag (!%p743_p5), [#allocation3], %s759_s25 }
  0x35   : > { %s182_s20 = scalar_lea.vmem (!%p743_p5), [#allocation2], %s400_s18 }
  0x38   : > { %594 = dma.done.wait (%p698_p8), %s179_s19, 256  }
  0x39   : > { %596 = vsyncadd (%p698_p8), %s179_s19, 4294967040  ;;  %s401_s5 = sshll.u32 %s759_s25, 1  ;;  %s188_s26 = scalar_lea.sflag [#allocation6], %s759_s25 }
  0x3a   : > { %s771_s27 = scalar_lea.vmem [#allocation5], %s401_s5 }
  0x3b   : > { %598 = dma.done.wait (%p698_p8), %s188_s26, 32  }
  0x3c   : > { %600 = vsyncadd (%p698_p8), %s188_s26, 4294967264  ;;  %v219_v0 = vld [vmem:[%s182_s20] sm:$0xff]  ;;  %v220_v1 = vld [vmem:[%s182_s20 + $0x8] sm:$0xff]  ;;  %s411_s21 = sshll.u32 %s619_s12, 8  ;;  %s216_s28 = scalar_lea.vmem [#allocation7], %s400_s18 }
  0x3d   : > { %221 = vadd.xlane.f32.xlu0 %v219_v0  ;;  %v228_v2 = vmul.f32 %v219_v0, %v219_v0  ;;  %v229_v3 = vmul.f32 %v220_v1, %v220_v1  ;;  %v403_v20 = vld [vmem:[%s771_s27] ss:$0 sm:$0xff]  ;;  %v404_v22 = vld [vmem:[%s771_s27 + $0x1] ss:$0 sm:$0xff]  ;;  %s280_s29 = sshll.u32 %s216_s28, 4  ;;  %s785_s8 = scalar_lea.hbm %s837_s2, %s411_s21  ;;  %s787_s29 = int_to_ptr.vmem [resolvable:$true] %s280_s29 }
  0x3e   : > { %s265_s15 = scalar_lea.sflag [#allocation4], %s759_s25  ;;  %s543_s16 = scalar_lea.vmem %s787_s29, 256 }
  0x3f   : > { %230 = vadd.xlane.f32.xlu1 %v228_v2  ;;  %p544_p8 = scmp.ne.s32.totalorder %s787_s29, %s543_s16  ;;  %s633_s12 = smov [#allocation7]  }
  0x40   : > { %s547_s30 = sshll.u32 %s633_s12, 4  ;;  %s548_s30 = int_to_ptr.vmem [resolvable:$false] %s547_s30 }
  0x41   : > { %223 = vadd.xlane.f32.xlu0 %v220_v1  ;;  %p545_p0 = pnand %p544_p8, %p702_p9  ;;  %s549_s4 = scalar_lea.vmem %s548_s30, 512 }
  0x42   : > { %p550_p5 = scmp.lt.s32.totalorder %s787_s29, %s548_s30  ;;  %p551_p6 = scmp.lt.s32.totalorder %s549_s4, %s543_s16 }
  0x43   : > { %232 = vadd.xlane.f32.xlu1 %v229_v3  ;;  %p546_p2 = pneg %p545_p0 }
  0x44   : > { %p552_p4 = por %p551_p6, %p550_p5 }
  0x46   : > { %p553_p7 = pnand %p552_p4, %p546_p2 }
  0xc6   : > { %v222_v4 = vpop.xlane.xlu0 %221 }
  0xc7   : > { %v226_v5 = vmul.f32 0.0078125, %v222_v4 }
  0xc8   : > { %v231_v6 = vpop.xlane.xlu1 %230 }
  0xc9   : > { %v236_v7 = vmul.f32 %v226_v5, %v226_v5  ;;  %v234_v8 = vmul.f32 0.0078125, %v231_v6  ;;  %v240_v18 = vsub.f32 %v219_v0, %v226_v5 }
  0xca   : > { %v224_v9 = vpop.xlane.xlu0 %223 }
  0xcb   : > { %v238_v10 = vsub.f32 %v234_v8, %v236_v7  ;;  %v227_v11 = vmul.f32 0.0078125, %v224_v9 }
  0xcc   : > { %v233_v12 = vpop.xlane.xlu1 %232 }
  0xcd   : > { %v242_v13 = vadd.f32 1e-06, %v238_v10  ;;  %v237_v14 = vmul.f32 %v227_v11, %v227_v11  ;;  %v235_v15 = vmul.f32 0.0078125, %v233_v12  ;;  %v241_v24 = vsub.f32 %v220_v1, %v227_v11 }
  0xcf   : > { %483 = vrsqrt.f32 %v242_v13  ;;  %v239_v16 = vsub.f32 %v235_v15, %v237_v14 }
  0xd1   : > { %v243_v17 = vadd.f32 1e-06, %v239_v16 }
  0xd3   : > { %485 = vrsqrt.f32 %v243_v17 }
  0xdc   : > { %v484_v19 = vpop.eup %483 }
  0xdd   : > { %v246_v21 = vmul.f32 %v484_v19, %v240_v18 }
  0xdf   : > { %v254_v23 = vmul.f32 %v403_v20, %v246_v21 }
  0xe0   : > { %v486_v25 = vpop.eup %485 }
  0xe1   : > { %v247_v26 = vmul.f32 %v486_v25, %v241_v24  ;;  %v260_v27 = vadd.f32 %v404_v22, %v254_v23 }
  0xe3   : > { %v255_v28 = vmul.f32 %v403_v20, %v247_v26  ;;  %262 = vst [vmem:[%s216_s28] sm:$0xff] %v260_v27 }
  0xe5   : > { %v261_v29 = vadd.f32 %v404_v22, %v255_v28 }
  0xe7   : > { %263 = vst [vmem:[%s216_s28 + $0x8] sm:$0xff] %v261_v29 }
  0xe8   : > { %556 = shalt.err (!%p553_p7)
}
  0xe9   : > { %s557_s6 = scalar_lea.hbm %s785_s8, 256  ;;  %s561_s20 = scalar_lea.hbm %s837_s2, 512 }
  0xea   : > { %p558_p1 = scmp.ne.s32.totalorder %s785_s8, %s557_s6  ;;  %p562_p3 = scmp.lt.s32.totalorder %s785_s8, %s837_s2 }
  0xeb   : > { %p563_p8 = scmp.lt.s32.totalorder %s561_s20, %s557_s6 }
  0xec   : > { %p559_p10 = pnand %p558_p1, %p702_p9 }
  0xed   : > { %p564_p0 = por %p563_p8, %p562_p3 }
  0xee   : > { %p560_p13 = pneg %p559_p10 }
  0xf0   : > { %p565_p2 = pnand %p564_p0, %p560_p13 }
  0xf2   : > { %568 = shalt.err (!%p565_p2)
}
  0xf3   : > { %s634_s27 = smov 128   ;;  %s635_s21 = smov 8  }
  0xf4   : > { %416 = dma.vmem_to_hbm [thread:$0]  (%p702_p9), %s787_s29, 256, %s785_s8, %s265_s15, %s634_s27, %s634_s27, %s635_s21  }
  0xf5 PF: > { %s295_s28 = sand.u32 1, %s607_s9   ;;  %p426_p5 = pnand %p393_p12, %p709_p11 }
  0xf6   : > { %s296_s3 = scalar_lea.sflag [#allocation4], %s295_s28 }
  0xf7   : > { %p427_p6 = pneg %p426_p5 }
  0xf9   : > { %602 = dma.done.wait (%p427_p6), %s296_s3, 256  }
  0xfa   : > { %604 = vsyncadd (%p427_p6), %s296_s3, 4294967040  ;;  %s21_s14 = sadd.s32 1, %s627_s14   ;;  %s844_s9 = smov %s611_s10 }
  0xfb   : > { %p18_p4 = scmp.ge.s32.totalorder %s21_s14, 4   ;;  %s845_s10 = smov %s615_s11 }
  0xfc   : > { %s846_s11 = smov %s707_s23  ;;  %s847_s12 = smov %s623_s13 }
  0xfd   : > { %s848_s13 = smov %s850_s17  ;;  %20 = sbr.rel (!%p18_p4) target bundleno = 8 (0x8), region = 86 }
 0x102   :  { %301 = vsyncpa [#allocation3], 1 }
 0x103   :  { %303 = vsyncpa [#allocation3 + $0x1], 1 }
 0x104   :  { %304 = vsyncpa [#allocation6], 1 }
 0x105   :  { %306 = vsyncpa [#allocation6 + $0x1], 1 }
 0x106   :  { %307 = vsyncpa [#allocation4], 1 }
 0x107   :  { %309 = vsyncpa [#allocation4 + $0x1], 1 }

</bundles_post_ra>
